<compile_context>
chip_gen: v6e
topology: v6e:2x2x1
jax: 0.10.0
libtpu: 0.0.40
codegen_flags: <defaults>
</compile_context>

<pallas_src>
import jax
import jax.numpy as jnp
from jax.experimental import pallas as pl
from jax.experimental.pallas import tpu as pltpu

VOCAB = 10          # nn.Embedding(10, 512)
VOCAB_PAD = 16      # padded vocab rows (valid tokens are 0..9), sublane-aligned
HIDDEN = 512
N_LATENTS = 64
BATCH = 8


def text_encoder_kernel(tok_ref, table_ref, w2_ref, b2_ref, w3_ref, b3_ref,
                        out_ref, h0_scr):
    B = h0_scr.shape[0]

    # Embedding lookup of the pre-swished table:
    #   swish(emb)[tok] == swish(emb[tok]).
    # Dynamic (1, 512) row reads from the VMEM table using SMEM token scalars,
    # written to static rows of the VMEM scratch.
    for b in range(B):
        h0_scr[pl.ds(b, 1), :] = table_ref[pl.ds(tok_ref[b], 1), :]
    h = h0_scr[...]                                         # (B, 512) f32, swish-ed

    # fc2 + swish: bf16 operands -> MXU with f32 accumulation; swish in f32.
    h = jnp.dot(h.astype(jnp.bfloat16), w2_ref[...],
                preferred_element_type=jnp.float32) + b2_ref[...]
    h = h * jax.nn.sigmoid(h)

    # Fused heads [fc31 | fc32]: one 128-lane matmul + unmasked lane-dense store.
    out_ref[...] = (jnp.dot(h.astype(jnp.bfloat16), w3_ref[...],
                            preferred_element_type=jnp.float32) + b3_ref[...])


def text_encoder_forward(x_tokens, params):
    """x_tokens: int32 (B,) indices in [0, VOCAB). Returns (mu, logvar)."""
    B = x_tokens.shape[0]
    smem_spec = pl.BlockSpec(memory_space=pltpu.MemorySpace.SMEM)
    vmem_spec = pl.BlockSpec(memory_space=pltpu.MemorySpace.VMEM)

    out = pl.pallas_call(
        text_encoder_kernel,
        out_shape=jax.ShapeDtypeStruct((B, 2 * N_LATENTS), jnp.float32),
        in_specs=[smem_spec,             # tokens (int32, SMEM)
                  vmem_spec,             # swish(emb) table (f32)
                  vmem_spec, vmem_spec,  # w2 (bf16), b2 (f32)
                  vmem_spec, vmem_spec], # w3 fused (bf16), b3 fused (f32)
        out_specs=vmem_spec,
        scratch_shapes=[pltpu.VMEM((B, HIDDEN), jnp.float32)],
    )(x_tokens.astype(jnp.int32),
      params["emb_swish"],
      params["w2_bf16"], params["b2"],
      params["w3_bf16"], params["b3"])

    mu = out[:, :N_LATENTS]
    logvar = out[:, N_LATENTS:]
    return mu, logvar


def init_params(key):
    ks = jax.random.split(key, 7)
    emb = jax.random.normal(ks[0], (VOCAB, HIDDEN), jnp.float32) * 0.02
    w2 = jax.random.normal(ks[1], (HIDDEN, HIDDEN), jnp.float32) * 0.02
    b2 = jax.random.normal(ks[2], (1, HIDDEN), jnp.float32) * 0.01
    w31 = jax.random.normal(ks[3], (HIDDEN, N_LATENTS), jnp.float32) * 0.02
    b31 = jax.random.normal(ks[4], (1, N_LATENTS), jnp.float32) * 0.01
    w32 = jax.random.normal(ks[5], (HIDDEN, N_LATENTS), jnp.float32) * 0.02
    b32 = jax.random.normal(ks[6], (1, N_LATENTS), jnp.float32) * 0.01

    # Reference (PyTorch-equivalent) f32 parameters.
    params = {"emb": emb, "w2": w2, "b2": b2,
              "w31": w31, "b31": b31, "w32": w32, "b32": b32}

    # Kernel-side derived parameters.
    emb_pad = jnp.zeros((VOCAB_PAD, HIDDEN), jnp.float32).at[:VOCAB].set(emb)
    params["emb_swish"] = emb_pad * jax.nn.sigmoid(emb_pad)        # swish(emb), f32
    params["w2_bf16"] = w2.astype(jnp.bfloat16)
    params["w3_bf16"] = jnp.concatenate([w31, w32], axis=1).astype(jnp.bfloat16)
    params["b3"] = jnp.concatenate([b31, b32], axis=1)             # f32 (1, 128)
    return params


def reference_forward_f32(x_tokens, params):
    """Plain-JAX f32 reference mirroring the PyTorch forward exactly."""
    h = params["emb"][x_tokens]
    h = h * jax.nn.sigmoid(h)
    h = h @ params["w2"] + params["b2"]
    h = h * jax.nn.sigmoid(h)
    mu = h @ params["w31"] + params["b31"]
    logvar = h @ params["w32"] + params["b32"]
    return mu, logvar


def reference_forward_bf16(x_tokens, params):
    """Reference mirroring the kernel's bf16-weight / f32-accumulate math."""
    h = params["emb_swish"][x_tokens]
    h = jnp.dot(h.astype(jnp.bfloat16), params["w2_bf16"],
                preferred_element_type=jnp.float32) + params["b2"]
    h = h * jax.nn.sigmoid(h)
    out = jnp.dot(h.astype(jnp.bfloat16), params["w3_bf16"],
                  preferred_element_type=jnp.float32) + params["b3"]
    return out[:, :N_LATENTS], out[:, N_LATENTS:]


if __name__ == "__main__":
    key = jax.random.PRNGKey(0)
    pkey, xkey = jax.random.split(key)
    params = init_params(pkey)

    # x: integer labels in [0, 10), shape (BATCH,)  (like torch LongTensor input)
    x = jax.random.randint(xkey, (BATCH,), 0, VOCAB, dtype=jnp.int32)

    mu, logvar = text_encoder_forward(x, params)
    jax.block_until_ready((mu, logvar))

    assert mu.shape == (BATCH, N_LATENTS) and logvar.shape == (BATCH, N_LATENTS)

    # Tight check vs a reference that mirrors the kernel's bf16/f32 math.
    mu_m, lv_m = reference_forward_bf16(x, params)
    assert jnp.allclose(mu, mu_m, atol=1e-4, rtol=1e-3)
    assert jnp.allclose(logvar, lv_m, atol=1e-4, rtol=1e-3)

    # Looser semantic check vs the pure-f32 PyTorch-equivalent forward
    # (difference is only bf16 quantization of the matmul weights/activations).
    mu_f, lv_f = reference_forward_f32(x, params)
    assert jnp.allclose(mu, mu_f, atol=1e-3, rtol=1e-2)
    assert jnp.allclose(logvar, lv_f, atol=1e-3, rtol=1e-2)

    print("KERNEL_OK")
</pallas_src>

<mosaic_0001>
module attributes {stable_mosaic.version = 11 : i64} {
  func.func @text_encoder_kernel(%arg0: memref<8xi32, #tpu.memory_space<smem>>, %arg1: memref<16x512xf32, #tpu.memory_space<vmem>>, %arg2: memref<512x512xbf16, #tpu.memory_space<vmem>>, %arg3: memref<1x512xf32, #tpu.memory_space<vmem>>, %arg4: memref<512x128xbf16, #tpu.memory_space<vmem>>, %arg5: memref<1x128xf32, #tpu.memory_space<vmem>>, %arg6: memref<8x128xf32, #tpu.memory_space<vmem>>, %arg7: memref<8x512xf32, #tpu.memory_space<vmem>>) attributes {dimension_semantics = [], scalar_prefetch = 0 : i64, scratch_operands = 1 : i64, tpu.core_type = #tpu.core_type<tc>} {
    %c0 = arith.constant 0 : index
    %0 = memref.load %arg0[%c0] : memref<8xi32, #tpu.memory_space<smem>>
    %1 = arith.index_cast %0 : i32 to index
    %c0_0 = arith.constant 0 : index
    %2 = vector.load %arg1[%1, %c0_0] : memref<16x512xf32, #tpu.memory_space<vmem>>, vector<1x512xf32>
    %c0_1 = arith.constant 0 : index
    %c0_2 = arith.constant 0 : index
    %3 = vector.load %arg7[%c0_1, %c0_2] : memref<8x512xf32, #tpu.memory_space<vmem>>, vector<1x512xf32>
    tpu.vector_store %arg7[%c0_1, %c0_2], %2 {strides = array<i32>} : memref<8x512xf32, #tpu.memory_space<vmem>>, vector<1x512xf32>,
    %c1 = arith.constant 1 : index
    %4 = memref.load %arg0[%c1] : memref<8xi32, #tpu.memory_space<smem>>
    %5 = arith.index_cast %4 : i32 to index
    %c0_3 = arith.constant 0 : index
    %6 = vector.load %arg1[%5, %c0_3] : memref<16x512xf32, #tpu.memory_space<vmem>>, vector<1x512xf32>
    %c1_4 = arith.constant 1 : index
    %c0_5 = arith.constant 0 : index
    %7 = vector.load %arg7[%c1_4, %c0_5] : memref<8x512xf32, #tpu.memory_space<vmem>>, vector<1x512xf32>
    tpu.vector_store %arg7[%c1_4, %c0_5], %6 {strides = array<i32>} : memref<8x512xf32, #tpu.memory_space<vmem>>, vector<1x512xf32>,
    %c2 = arith.constant 2 : index
    %8 = memref.load %arg0[%c2] : memref<8xi32, #tpu.memory_space<smem>>
    %9 = arith.index_cast %8 : i32 to index
    %c0_6 = arith.constant 0 : index
    %10 = vector.load %arg1[%9, %c0_6] : memref<16x512xf32, #tpu.memory_space<vmem>>, vector<1x512xf32>
    %c2_7 = arith.constant 2 : index
    %c0_8 = arith.constant 0 : index
    %11 = vector.load %arg7[%c2_7, %c0_8] : memref<8x512xf32, #tpu.memory_space<vmem>>, vector<1x512xf32>
    tpu.vector_store %arg7[%c2_7, %c0_8], %10 {strides = array<i32>} : memref<8x512xf32, #tpu.memory_space<vmem>>, vector<1x512xf32>,
    %c3 = arith.constant 3 : index
    %12 = memref.load %arg0[%c3] : memref<8xi32, #tpu.memory_space<smem>>
    %13 = arith.index_cast %12 : i32 to index
    %c0_9 = arith.constant 0 : index
    %14 = vector.load %arg1[%13, %c0_9] : memref<16x512xf32, #tpu.memory_space<vmem>>, vector<1x512xf32>
    %c3_10 = arith.constant 3 : index
    %c0_11 = arith.constant 0 : index
    %15 = vector.load %arg7[%c3_10, %c0_11] : memref<8x512xf32, #tpu.memory_space<vmem>>, vector<1x512xf32>
    tpu.vector_store %arg7[%c3_10, %c0_11], %14 {strides = array<i32>} : memref<8x512xf32, #tpu.memory_space<vmem>>, vector<1x512xf32>,
    %c4 = arith.constant 4 : index
    %16 = memref.load %arg0[%c4] : memref<8xi32, #tpu.memory_space<smem>>
    %17 = arith.index_cast %16 : i32 to index
    %c0_12 = arith.constant 0 : index
    %18 = vector.load %arg1[%17, %c0_12] : memref<16x512xf32, #tpu.memory_space<vmem>>, vector<1x512xf32>
    %c4_13 = arith.constant 4 : index
    %c0_14 = arith.constant 0 : index
    %19 = vector.load %arg7[%c4_13, %c0_14] : memref<8x512xf32, #tpu.memory_space<vmem>>, vector<1x512xf32>
    tpu.vector_store %arg7[%c4_13, %c0_14], %18 {strides = array<i32>} : memref<8x512xf32, #tpu.memory_space<vmem>>, vector<1x512xf32>,
    %c5 = arith.constant 5 : index
    %20 = memref.load %arg0[%c5] : memref<8xi32, #tpu.memory_space<smem>>
    %21 = arith.index_cast %20 : i32 to index
    %c0_15 = arith.constant 0 : index
    %22 = vector.load %arg1[%21, %c0_15] : memref<16x512xf32, #tpu.memory_space<vmem>>, vector<1x512xf32>
    %c5_16 = arith.constant 5 : index
    %c0_17 = arith.constant 0 : index
    %23 = vector.load %arg7[%c5_16, %c0_17] : memref<8x512xf32, #tpu.memory_space<vmem>>, vector<1x512xf32>
    tpu.vector_store %arg7[%c5_16, %c0_17], %22 {strides = array<i32>} : memref<8x512xf32, #tpu.memory_space<vmem>>, vector<1x512xf32>,
    %c6 = arith.constant 6 : index
    %24 = memref.load %arg0[%c6] : memref<8xi32, #tpu.memory_space<smem>>
    %25 = arith.index_cast %24 : i32 to index
    %c0_18 = arith.constant 0 : index
    %26 = vector.load %arg1[%25, %c0_18] : memref<16x512xf32, #tpu.memory_space<vmem>>, vector<1x512xf32>
    %c6_19 = arith.constant 6 : index
    %c0_20 = arith.constant 0 : index
    %27 = vector.load %arg7[%c6_19, %c0_20] : memref<8x512xf32, #tpu.memory_space<vmem>>, vector<1x512xf32>
    tpu.vector_store %arg7[%c6_19, %c0_20], %26 {strides = array<i32>} : memref<8x512xf32, #tpu.memory_space<vmem>>, vector<1x512xf32>,
    %c7 = arith.constant 7 : index
    %28 = memref.load %arg0[%c7] : memref<8xi32, #tpu.memory_space<smem>>
    %29 = arith.index_cast %28 : i32 to index
    %c0_21 = arith.constant 0 : index
    %30 = vector.load %arg1[%29, %c0_21] : memref<16x512xf32, #tpu.memory_space<vmem>>, vector<1x512xf32>
    %c7_22 = arith.constant 7 : index
    %c0_23 = arith.constant 0 : index
    %31 = vector.load %arg7[%c7_22, %c0_23] : memref<8x512xf32, #tpu.memory_space<vmem>>, vector<1x512xf32>
    tpu.vector_store %arg7[%c7_22, %c0_23], %30 {strides = array<i32>} : memref<8x512xf32, #tpu.memory_space<vmem>>, vector<1x512xf32>,
    %c0_24 = arith.constant 0 : index
    %c0_25 = arith.constant 0 : index
    %32 = vector.load %arg7[%c0_24, %c0_25] : memref<8x512xf32, #tpu.memory_space<vmem>>, vector<8x512xf32>
    %33 = arith.truncf %32 : vector<8x512xf32> to vector<8x512xbf16>
    %c0_26 = arith.constant 0 : index
    %c0_27 = arith.constant 0 : index
    %34 = vector.load %arg2[%c0_26, %c0_27] : memref<512x512xbf16, #tpu.memory_space<vmem>>, vector<512x512xbf16>
    %cst = arith.constant dense<0.000000e+00> : vector<8x512xf32>
    %35 = tpu.matmul %33, %34, %cst {dimension_numbers = #tpu.dot_dimension_numbers<[1], [0], [0], [1], [0, 0, 1, 1], [], []>} : vector<8x512xbf16>, vector<512x512xbf16>, vector<8x512xf32> -> vector<8x512xf32>
    %c0_28 = arith.constant 0 : index
    %c0_29 = arith.constant 0 : index
    %36 = vector.load %arg3[%c0_28, %c0_29] : memref<1x512xf32, #tpu.memory_space<vmem>>, vector<1x512xf32>
    %37 = vector.broadcast %36 : vector<1x512xf32> to vector<8x512xf32>
    %38 = arith.addf %35, %37 : vector<8x512xf32>
    %39 = arith.negf %38 : vector<8x512xf32>
    %40 = math.exp %39 : vector<8x512xf32>
    %cst_30 = arith.constant 1.000000e+00 : f32
    %41 = vector.broadcast %cst_30 : f32 to vector<8x512xf32>
    %42 = arith.addf %41, %40 : vector<8x512xf32>
    %43 = arith.divf %41, %42 : vector<8x512xf32>
    %44 = arith.mulf %38, %43 : vector<8x512xf32>
    %45 = arith.truncf %44 : vector<8x512xf32> to vector<8x512xbf16>
    %c0_31 = arith.constant 0 : index
    %c0_32 = arith.constant 0 : index
    %46 = vector.load %arg4[%c0_31, %c0_32] : memref<512x128xbf16, #tpu.memory_space<vmem>>, vector<512x128xbf16>
    %cst_33 = arith.constant dense<0.000000e+00> : vector<8x128xf32>
    %47 = tpu.matmul %45, %46, %cst_33 {dimension_numbers = #tpu.dot_dimension_numbers<[1], [0], [0], [1], [0, 0, 1, 1], [], []>} : vector<8x512xbf16>, vector<512x128xbf16>, vector<8x128xf32> -> vector<8x128xf32>
    %c0_34 = arith.constant 0 : index
    %c0_35 = arith.constant 0 : index
    %48 = vector.load %arg5[%c0_34, %c0_35] : memref<1x128xf32, #tpu.memory_space<vmem>>, vector<1x128xf32>
    %49 = vector.broadcast %48 : vector<1x128xf32> to vector<8x128xf32>
    %50 = arith.addf %47, %49 : vector<8x128xf32>
    %c0_36 = arith.constant 0 : index
    %c0_37 = arith.constant 0 : index
    %51 = vector.load %arg6[%c0_36, %c0_37] : memref<8x128xf32, #tpu.memory_space<vmem>>, vector<8x128xf32>
    tpu.vector_store %arg6[%c0_36, %c0_37], %50 {strides = array<i32>} : memref<8x128xf32, #tpu.memory_space<vmem>>, vector<8x128xf32>,
    return
  }
}

</mosaic_0001>

<bundles_post_ra>
// kernel: tpu_custom_call.1
= control target key start
LH: loop header
LB: loop body
LE: loop exit
PB: predicated region body
PF: predicated region fallthrough
CT: control target
= control target key end

     0   :  { %11 = vsyncpa [#allocation6], 0  ;;  %s2303_s0 = inlined_call_operand.hbm [shape: s32[8], index: 0, kind: input, shape index: {}]   ;;  %s2304_s1 = inlined_call_operand.hbm [shape: f32[16,512], index: 1, kind: input, shape index: {}]   ;;  %s2305_s2 = inlined_call_operand.hbm [shape: bf16[512,512], index: 2, kind: input, shape index: {}]   ;;  %s2306_s3 = inlined_call_operand.vmem [shape: f32[1,512], index: 3, kind: input, shape index: {}]   ;;  %s2307_s4 = inlined_call_operand.hbm [shape: bf16[512,128], index: 4, kind: input, shape index: {}]   ;;  %s2308_s5 = inlined_call_operand.vmem [shape: f32[1,128], index: 5, kind: input, shape index: {}]   ;;  %s2309_s6 = inlined_call_operand.hbm [shape: f32[8,128], index: 6, kind: output, shape index: {}]  }
   0x1   :  { %12 = vsyncpa [#allocation4], 0 }
   0x2   :  { %13 = vsyncpa [#allocation9], 0 }
   0x3   :  { %14 = vsyncpa [#allocation5], 0  ;;  %s2150_s21 = smov [#allocation8]  }
   0x4   :  { %s40_s22 = sshll.u32 %s2150_s21, 4  ;;  %s41_s22 = int_to_ptr.vmem [resolvable:$true] %s40_s22 }
   0x5   :  { %s2062_s23 = scalar_lea.vmem %s41_s22, 16384  ;;  %p2067_p1 = scmp.lt.s32.totalorder %s41_s22, %s41_s22 }
   0x6   :  { %p2063_p0 = scmp.ne.s32.totalorder %s41_s22, %s2062_s23  ;;  %p2068_p2 = scmp.lt.s32.totalorder %s2062_s23, %s2062_s23 }
   0x8   :  { %p2069_p3 = por %p2068_p2, %p2067_p1 }
   0xa   :  { %p2070_p4 = pnand %p2069_p3, %p2063_p0 }
   0xc   :  { %2073 = shalt.err (!%p2070_p4)
}
   0xd   :  { %s2151_s24 = smov 256   ;;  %s2152_s25 = smov 16  }
   0xe   :  { %46 = dma.hbm_to_vmem [thread:$0]  %s2305_s2, 16384, %s41_s22, [#allocation9], %s2151_s24, %s2151_s24, %s2152_s25  }
   0xf   :  { %s2153_s28 = smov [#allocation3]   ;;  %s2154_s7 = smov [#allocation7]  }
  0x10   :  { %22 = dma.hbm_to_smem %s2303_s0, 16, %s2153_s28, [#allocation6]  }
  0x11   :  { %s28_s8 = sshll.u32 %s2154_s7, 4  ;;  %s29_s8 = int_to_ptr.vmem [resolvable:$true] %s28_s8 }
  0x12   :  { %s2090_s9 = scalar_lea.vmem %s29_s8, 1024  ;;  %p2095_p6 = scmp.lt.s32.totalorder %s29_s8, %s29_s8 }
  0x13   :  { %p2091_p5 = scmp.ne.s32.totalorder %s29_s8, %s2090_s9  ;;  %p2096_p7 = scmp.lt.s32.totalorder %s2090_s9, %s2090_s9 }
  0x15   :  { %p2097_p8 = por %p2096_p7, %p2095_p6 }
  0x17   :  { %p2098_p9 = pnand %p2097_p8, %p2091_p5 }
  0x19   :  { %2101 = shalt.err (!%p2098_p9)
}
  0x1a   :  { %s2155_s10 = smov 512   ;;  %s2156_s11 = smov 32  }
  0x1b   :  { %34 = dma.hbm_to_vmem [thread:$0]  %s2304_s1, 1024, %s29_s8, [#allocation4], %s2155_s10, %s2155_s10, %s2156_s11  }
  0x1c   :  { %s2157_s2 = smov [#allocation10]  }
  0x1d   :  { %s54_s14 = sshll.u32 %s2157_s2, 4  ;;  %s55_s14 = int_to_ptr.vmem [resolvable:$true] %s54_s14 }
  0x1e   :  { %s2110_s0 = scalar_lea.vmem %s55_s14, 4096  ;;  %p2115_p11 = scmp.lt.s32.totalorder %s55_s14, %s55_s14 }
  0x1f   :  { %p2111_p10 = scmp.ne.s32.totalorder %s55_s14, %s2110_s0  ;;  %p2116_p12 = scmp.lt.s32.totalorder %s2110_s0, %s2110_s0 }
  0x21   :  { %p2117_p13 = por %p2116_p12, %p2115_p11 }
  0x23   :  { %p2118_p0 = pnand %p2117_p13, %p2111_p10 }
  0x25   :  { %2121 = shalt.err (!%p2118_p0)
}
  0x26   :  { %s2158_s15 = smov 64   ;;  %s2159_s16 = smov 4  }
  0x27   :  { %60 = dma.hbm_to_vmem [thread:$0]  %s2307_s4, 4096, %s55_s14, [#allocation9], %s2158_s15, %s2158_s15, %s2159_s16  }
  0x28   :  { %2142 = dma.done.wait [#allocation6], 16  }
  0x29   :  { %2143 = vsyncadd [#allocation6], 4294967280 }
  0x2a   :  { %2144 = dma.done.wait [#allocation4], 1024  }
  0x2b   :  { %2145 = vsyncadd [#allocation4], 4294966272 }
  0x2c   :  { %2146 = dma.done.wait [#allocation9], 20480  }
  0x2d   :  { %2147 = vsyncadd [#allocation9], 4294946816 }
  0x2e   :  { %75 = sfence }
  0x2f   :  { %v1814_v0 = vld [vmem:[#allocation8 + $0xe4] ss:$16 sps:$4 sm:$0xff]   ;;  %v1818_v2 = vld [vmem:[#allocation8 + $0xe0] ss:$16 sps:$4 sm:$0xff]   ;;  %s2208_s1 = sld [smem:[#allocation3]]  ;;  %v87_v40 = vlaneseq }
  0x30   :  { %v1816_v1 = vld [vmem:[#allocation8 + $0x2e4] ss:$16 sps:$4 sm:$0xff]   ;;  %982 = vmatprep.subr.bf16.mxu0 %v1814_v0  ;;  %v1819_v3 = vld [vmem:[#allocation8 + $0x2e0] ss:$16 sps:$4 sm:$0xff]   ;;  %s2210_s4 = sld [smem:[#allocation3 + $0x1]] }
  0x31   :  { %1023 = vmatprep.subr.bf16.mxu1 %v1816_v1  ;;  %v1820_v4 = vld [vmem:[#allocation8 + $0xc4] ss:$16 sps:$4 sm:$0xff]   ;;  %983 = vmatpush1.bf16.msra.mxu0 %v1818_v2  ;;  %v1824_v6 = vld [vmem:[#allocation8 + $0xc0] ss:$16 sps:$4 sm:$0xff]   ;;  %s2212_s19 = sld [smem:[#allocation3 + $0x2]]  ;;  %vm2253_vm0 = vcmp.lt.s32.totalorder %v87_v40, 512 }
  0x32   :  { %1024 = vmatpush1.bf16.msra.mxu1 %v1819_v3  ;;  %v1822_v5 = vld [vmem:[#allocation8 + $0x2c4] ss:$16 sps:$4 sm:$0xff]   ;;  %984 = vmatprep.subr.bf16.mxu0 %v1820_v4  ;;  %v1825_v7 = vld [vmem:[#allocation8 + $0x2c0] ss:$16 sps:$4 sm:$0xff]   ;;  %s2216_s22 = sld [smem:[#allocation3 + $0x3]] }
  0x33   :  { %1025 = vmatprep.subr.bf16.mxu1 %v1822_v5  ;;  %v1826_v8 = vld [vmem:[#allocation8 + $0xa4] ss:$16 sps:$4 sm:$0xff]   ;;  %v1830_v10 = vld [vmem:[#allocation8 + $0xa0] ss:$16 sps:$4 sm:$0xff]   ;;  %s2221_s28 = sld [smem:[#allocation3 + $0x4]] }
  0x34   :  { %v1828_v9 = vld [vmem:[#allocation8 + $0x2a4] ss:$16 sps:$4 sm:$0xff]   ;;  %v1831_v11 = vld [vmem:[#allocation8 + $0x2a0] ss:$16 sps:$4 sm:$0xff]   ;;  %s2223_s29 = sld [smem:[#allocation3 + $0x5]] }
  0x35   :  { %985 = vmatpush1.bf16.msra.mxu0 %v1824_v6  ;;  %v1832_v12 = vld [vmem:[#allocation8 + $0x84] ss:$16 sps:$4 sm:$0xff]   ;;  %v1836_v14 = vld [vmem:[#allocation8 + $0x80] ss:$16 sps:$4 sm:$0xff]   ;;  %s78_s20 = sshra.s32 %s2208_s1, 3  ;;  %s81_s23 = sand.u32 7, %s2208_s1 }
  0x36   :  { %1026 = vmatpush1.bf16.msra.mxu1 %v1825_v7  ;;  %986 = vmatprep.subr.bf16.mxu0 %v1826_v8  ;;  %v1834_v13 = vld [vmem:[#allocation8 + $0x284] ss:$16 sps:$4 sm:$0xff]   ;;  %v1837_v15 = vld [vmem:[#allocation8 + $0x280] ss:$16 sps:$4 sm:$0xff]   ;;  %s94_s21 = sshra.s32 %s2210_s4, 3  ;;  %s1751_s24 = sshll.u32 %s78_s20, 5 }
  0x37   :  { %1027 = vmatprep.subr.bf16.mxu1 %v1828_v9  ;;  %v1838_v16 = vld [vmem:[#allocation8 + $0x64] ss:$16 sps:$4 sm:$0xff]   ;;  %v1842_v18 = vld [vmem:[#allocation8 + $0x60] ss:$16 sps:$4 sm:$0xff]   ;;  %s97_s25 = sand.u32 7, %s2210_s4  ;;  %s1752_s26 = sshll.u32 %s94_s21, 5 }
  0x38   :  { %v1840_v17 = vld [vmem:[#allocation8 + $0x264] ss:$16 sps:$4 sm:$0xff]   ;;  %v1843_v19 = vld [vmem:[#allocation8 + $0x260] ss:$16 sps:$4 sm:$0xff]   ;;  %s107_s27 = sshra.s32 %s2212_s19, 3  ;;  %s2225_s30 = sadd.s32 %s1751_s24, %s81_s23 }
  0x39   :  { %987 = vmatpush1.bf16.msra.mxu0 %v1830_v10  ;;  %v1844_v20 = vld [vmem:[#allocation8 + $0x44] ss:$16 sps:$4 sm:$0xff]   ;;  %v1848_v22 = vld [vmem:[#allocation8 + $0x40] ss:$16 sps:$4 sm:$0xff]   ;;  %s2227_s7 = sadd.s32 %s1752_s26, %s97_s25  ;;  %s2229_s8 = sld [smem:[#allocation3 + $0x6]] }
  0x3a   :  { %1028 = vmatpush1.bf16.msra.mxu1 %v1831_v11  ;;  %988 = vmatprep.subr.bf16.mxu0 %v1832_v12  ;;  %v1846_v21 = vld [vmem:[#allocation8 + $0x244] ss:$16 sps:$4 sm:$0xff]   ;;  %v1849_v23 = vld [vmem:[#allocation8 + $0x240] ss:$16 sps:$4 sm:$0xff]   ;;  %s110_s9 = sand.u32 7, %s2212_s19  ;;  %s1753_s10 = sshll.u32 %s107_s27, 5 }
  0x3b   :  { %1029 = vmatprep.subr.bf16.mxu1 %v1834_v13  ;;  %v1850_v24 = vld [vmem:[#allocation8 + $0x24] ss:$16 sps:$4 sm:$0xff]   ;;  %v1854_v26 = vld [vmem:[#allocation8 + $0x20] ss:$16 sps:$4 sm:$0xff]   ;;  %s2232_s11 = sld [smem:[#allocation3 + $0x7]]  ;;  %s120_s12 = sshra.s32 %s2216_s22, 3 }
  0x3c   :  { %v1852_v25 = vld [vmem:[#allocation8 + $0x224] ss:$16 sps:$4 sm:$0xff]   ;;  %v1855_v27 = vld [vmem:[#allocation8 + $0x220] ss:$16 sps:$4 sm:$0xff]   ;;  %s2235_s13 = sadd.s32 %s1753_s10, %s110_s9  ;;  %s133_s2 = sshra.s32 %s2221_s28, 3 }
  0x3d   :  { %989 = vmatpush1.bf16.msra.mxu0 %v1836_v14  ;;  %v1856_v28 = vld [vmem:[#allocation8 + $0x4] ss:$16 sps:$4 sm:$0xff]   ;;  %v1860_v30 = vld [vmem:[#allocation8] ss:$16 sps:$4 sm:$0xff]   ;;  %s123_s14 = sand.u32 7, %s2216_s22  ;;  %s146_s0 = sshra.s32 %s2223_s29, 3 }
  0x3e   :  { %1030 = vmatpush1.bf16.msra.mxu1 %v1837_v15  ;;  %990 = vmatprep.subr.bf16.mxu0 %v1838_v16  ;;  %v1858_v29 = vld [vmem:[#allocation8 + $0x204] ss:$16 sps:$4 sm:$0xff]   ;;  %v1861_v31 = vld [vmem:[#allocation8 + $0x200] ss:$16 sps:$4 sm:$0xff]   ;;  %s1754_s15 = sshll.u32 %s120_s12, 5  ;;  %s136_s16 = sand.u32 7, %s2221_s28 }
  0x3f   :  { %1031 = vmatprep.subr.bf16.mxu1 %v1840_v17  ;;  %v1862_v32 = vld [vmem:[#allocation8 + $0x1e4] ss:$16 sps:$4 sm:$0xff]   ;;  %v1866_v34 = vld [vmem:[#allocation8 + $0x1e0] ss:$16 sps:$4 sm:$0xff]   ;;  %s1755_s17 = sshll.u32 %s133_s2, 5  ;;  %s159_s18 = sshra.s32 %s2229_s8, 3 }
  0x40   :  { %v1864_v33 = vld [vmem:[#allocation8 + $0x3e4] ss:$16 sps:$4 sm:$0xff]   ;;  %v1867_v35 = vld [vmem:[#allocation8 + $0x3e0] ss:$16 sps:$4 sm:$0xff]   ;;  %s149_s1 = sand.u32 7, %s2223_s29  ;;  %s1756_s4 = sshll.u32 %s146_s0, 5 }
  0x41   :  { %991 = vmatpush1.bf16.msra.mxu0 %v1842_v18  ;;  %v1868_v36 = vld [vmem:[#allocation8 + $0x1c4] ss:$16 sps:$4 sm:$0xff]   ;;  %v1872_v38 = vld [vmem:[#allocation8 + $0x1c0] ss:$16 sps:$4 sm:$0xff]   ;;  %s162_s19 = sand.u32 7, %s2229_s8  ;;  %s172_s20 = sshra.s32 %s2232_s11, 3 }
  0x42   :  { %1032 = vmatpush1.bf16.msra.mxu1 %v1843_v19  ;;  %992 = vmatprep.subr.bf16.mxu0 %v1844_v20  ;;  %v1870_v37 = vld [vmem:[#allocation8 + $0x3c4] ss:$16 sps:$4 sm:$0xff]   ;;  %v1873_v39 = vld [vmem:[#allocation8 + $0x3c0] ss:$16 sps:$4 sm:$0xff]   ;;  %s1757_s21 = sshll.u32 %s159_s18, 5  ;;  %s175_s22 = sand.u32 7, %s2232_s11 }
  0x43   :  { %1033 = vmatprep.subr.bf16.mxu1 %v1846_v21  ;;  %v1874_v41 = vld [vmem:[#allocation8 + $0x1a4] ss:$16 sps:$4 sm:$0xff]   ;;  %s2246_s23 = sadd.s32 %s1754_s15, %s123_s14  ;;  %s1758_s24 = sshll.u32 %s172_s20, 5  ;;  %v1878_v43 = vld [vmem:[#allocation8 + $0x1a0] ss:$16 sps:$4 sm:$0xff]  }
  0x44   :  { %v1876_v42 = vld [vmem:[#allocation8 + $0x3a4] ss:$16 sps:$4 sm:$0xff]   ;;  %s2248_s25 = sadd.s32 %s1755_s17, %s136_s16  ;;  %s2250_s26 = sadd.s32 %s1756_s4, %s149_s1  ;;  %v1879_v44 = vld [vmem:[#allocation8 + $0x3a0] ss:$16 sps:$4 sm:$0xff]   ;;  %v1912_v15 = vld [vmem:[#allocation8 + $0xec] ss:$16 sps:$4 sm:$0xff]  }
  0x45   :  { %993 = vmatpush1.bf16.msra.mxu0 %v1848_v22  ;;  %s2257_s27 = sadd.s32 %s1757_s21, %s162_s19  ;;  %s2259_s28 = sadd.s32 %s1758_s24, %s175_s22  ;;  %v1880_v46 = vld [vmem:[#allocation8 + $0x184] ss:$16 sps:$4 sm:$0xff]   ;;  %v1884_v48 = vld [vmem:[#allocation8 + $0x180] ss:$16 sps:$4 sm:$0xff]   ;;  %v1915_v17 = vld [vmem:[#allocation8 + $0x2ec] ss:$16 sps:$4 sm:$0xff]  }
  0x46   :  { %1034 = vmatpush1.bf16.msra.mxu1 %v1849_v23  ;;  %994 = vmatprep.subr.bf16.mxu0 %v1850_v24  ;;  %v1882_v47 = vld [vmem:[#allocation8 + $0x384] ss:$16 sps:$4 sm:$0xff]   ;;  %v1885_v49 = vld [vmem:[#allocation8 + $0x380] ss:$16 sps:$4 sm:$0xff]   ;;  %s85_s29 = scalar_lea.vmem [#allocation7], %s2225_s30  ;;  %s101_s8 = scalar_lea.vmem [#allocation7], %s2227_s7 }
  0x47   :  { %1035 = vmatprep.subr.bf16.mxu1 %v1852_v25  ;;  %v1886_v50 = vld [vmem:[#allocation8 + $0x164] ss:$16 sps:$4 sm:$0xff]   ;;  %v86_v52 = vld [vmem:[%s85_s29] ss:$8 sm:$0xf]  ;;  %s114_s9 = scalar_lea.vmem [#allocation7], %s2235_s13 }
  0x48   :  { %v1888_v51 = vld [vmem:[#allocation8 + $0x364] ss:$16 sps:$4 sm:$0xff]   ;;  %v102_v53 = vld [vmem:[%s101_s8] ss:$8 sm:$0xf]  ;;  %s127_s10 = scalar_lea.vmem [#allocation7], %s2246_s23 }
  0x49   :  { %995 = vmatpush1.bf16.msra.mxu0 %v1854_v26  ;;  %91 = vst.msk [vmem:[#allocation2] ss:$8 sm:$0xf] %vm2253_vm0, %v86_v52  ;;  %104 = vst.msk [vmem:[#allocation2 + $0x1] ss:$8 sm:$0xf] %vm2253_vm0, %v102_v53 }
  0x4a   :  { %1036 = vmatpush1.bf16.msra.mxu1 %v1855_v27  ;;  %996 = vmatprep.subr.bf16.mxu0 %v1856_v28  ;;  %v115_v54 = vld [vmem:[%s114_s9] ss:$8 sm:$0xf]  ;;  %s140_s30 = scalar_lea.vmem [#allocation7], %s2248_s25  ;;  %s153_s7 = scalar_lea.vmem [#allocation7], %s2250_s26 }
  0x4b   :  { %1037 = vmatprep.subr.bf16.mxu1 %v1858_v29  ;;  %v128_v55 = vld [vmem:[%s127_s10] ss:$8 sm:$0xf]  ;;  %117 = vst.msk [vmem:[#allocation2 + $0x2] ss:$8 sm:$0xf] %vm2253_vm0, %v115_v54 }
  0x4c   :  { %130 = vst.msk [vmem:[#allocation2 + $0x3] ss:$8 sm:$0xf] %vm2253_vm0, %v128_v55  ;;  %v141_v56 = vld [vmem:[%s140_s30] ss:$8 sm:$0xf] }
  0x4d   :  { %997 = vmatpush1.bf16.msra.mxu0 %v1860_v30  ;;  %v154_v57 = vld [vmem:[%s153_s7] ss:$8 sm:$0xf]  ;;  %143 = vst.msk [vmem:[#allocation2 + $0x4] ss:$8 sm:$0xf] %vm2253_vm0, %v141_v56 }
  0x4e   :  { %1038 = vmatpush1.bf16.msra.mxu1 %v1861_v31  ;;  %998 = vmatprep.subr.bf16.mxu0 %v1862_v32  ;;  %156 = vst.msk [vmem:[#allocation2 + $0x5] ss:$8 sm:$0xf] %vm2253_vm0, %v154_v57  ;;  %s166_s11 = scalar_lea.vmem [#allocation7], %s2257_s27  ;;  %s179_s12 = scalar_lea.vmem [#allocation7], %s2259_s28 }
  0x4f   :  { %1039 = vmatprep.subr.bf16.mxu1 %v1864_v33  ;;  %v167_v58 = vld [vmem:[%s166_s11] ss:$8 sm:$0xf]  ;;  %v1892_v62 = vld [vmem:[#allocation8 + $0x144] ss:$16 sps:$4 sm:$0xff]   ;;  %s2160_s0 = smov [#allocation11]  }
  0x50   :  { %v180_v59 = vld [vmem:[%s179_s12] ss:$8 sm:$0xf]  ;;  %169 = vst.msk [vmem:[#allocation2 + $0x6] ss:$8 sm:$0xf] %vm2253_vm0, %v167_v58 }
  0x51   :  { %999 = vmatpush2.bf16.msra.mxu0 %v1866_v34  ;;  %v1890_v60 = vld [vmem:[#allocation8 + $0x160] ss:$16 sps:$4 sm:$0xff]   ;;  %182 = vst.msk [vmem:[#allocation2 + $0x7] ss:$8 sm:$0xf] %vm2253_vm0, %v180_v59  ;;  %s1528_s15 = sshll.u32 %s2160_s0, 4  ;;  %s1529_s15 = int_to_ptr.vmem [resolvable:$true] %s1528_s15 }
  0x52   :  { %1040 = vmatpush2.bf16.msra.mxu1 %v1867_v35  ;;  %1000 = vmatprep.subr.bf16.mxu0 %v1868_v36  ;;  %v1891_v61 = vld [vmem:[#allocation8 + $0x360] ss:$16 sps:$4 sm:$0xff]   ;;  %v1894_v63 = vld [vmem:[#allocation8 + $0x344] ss:$16 sps:$4 sm:$0xff]   ;;  %v1910_v20 = vld [vmem:[#allocation8 + $0xe8] ss:$16 sps:$4 sm:$0xff]   ;;  %p2127_p2 = scmp.lt.s32.totalorder %s1529_s15, %s1529_s15 }
  0x53   :  { %1041 = vmatprep.subr.bf16.mxu1 %v1870_v37  ;;  %v1896_v0 = vld [vmem:[#allocation8 + $0x140] ss:$16 sps:$4 sm:$0xff]   ;;  %v1898_v2 = vld [vmem:[#allocation8 + $0x124] ss:$16 sps:$4 sm:$0xff]   ;;  %v1913_v21 = vld [vmem:[#allocation8 + $0x2e8] ss:$16 sps:$4 sm:$0xff]  }
  0x54   :  { %v1897_v1 = vld [vmem:[#allocation8 + $0x340] ss:$16 sps:$4 sm:$0xff]   ;;  %v1900_v3 = vld [vmem:[#allocation8 + $0x324] ss:$16 sps:$4 sm:$0xff]   ;;  %v1918_v22 = vld [vmem:[#allocation8 + $0xcc] ss:$16 sps:$4 sm:$0xff]  }
  0x55   :  { %1001 = vmatpush2.bf16.msra.mxu0 %v1872_v38  ;;  %v1902_v6 = vld [vmem:[#allocation8 + $0x120] ss:$16 sps:$4 sm:$0xff]   ;;  %v1904_v10 = vld [vmem:[#allocation8 + $0x104] ss:$16 sps:$4 sm:$0xff]   ;;  %v1921_v23 = vld [vmem:[#allocation8 + $0x2cc] ss:$16 sps:$4 sm:$0xff]  }
  0x56   :  { %1042 = vmatpush2.bf16.msra.mxu1 %v1873_v39  ;;  %1002 = vmatprep.subr.bf16.mxu0 %v1874_v41  ;;  %v1903_v7 = vld [vmem:[#allocation8 + $0x320] ss:$16 sps:$4 sm:$0xff]   ;;  %v1906_v11 = vld [vmem:[#allocation8 + $0x304] ss:$16 sps:$4 sm:$0xff]   ;;  %v1916_v24 = vld [vmem:[#allocation8 + $0xc8] ss:$16 sps:$4 sm:$0xff]  }
  0x57   :  { %1043 = vmatprep.subr.bf16.mxu1 %v1876_v42  ;;  %v1908_v12 = vld [vmem:[#allocation8 + $0x100] ss:$16 sps:$4 sm:$0xff]   ;;  %v1919_v25 = vld [vmem:[#allocation8 + $0x2c8] ss:$16 sps:$4 sm:$0xff]   ;;  %v1924_v26 = vld [vmem:[#allocation8 + $0xac] ss:$16 sps:$4 sm:$0xff]  }
  0x58   :  { %v185_v4 = vld [vmem:[#allocation2 + $0x8] sm:$0xff]  ;;  %v187_v5 = vld [vmem:[#allocation2 + $0x18] sm:$0xff]  ;;  %v1909_v13 = vld [vmem:[#allocation8 + $0x300] ss:$16 sps:$4 sm:$0xff]   ;;  %s2122_s16 = scalar_lea.vmem %s1529_s15, 128 }
  0x59   :  { %1003 = vmatpush2.bf16.msra.mxu0 %v1878_v43  ;;  %v189_v8 = vpack.c.bf16 %v185_v4, %v185_v4  ;;  %v191_v9 = vpack.c.bf16 %v187_v5, %v187_v5  ;;  %v184_v14 = vld [vmem:[#allocation2] sm:$0xff]  ;;  %v186_v16 = vld [vmem:[#allocation2 + $0x10] sm:$0xff]  ;;  %v1927_v27 = vld [vmem:[#allocation8 + $0x2ac] ss:$16 sps:$4 sm:$0xff]   ;;  %p2123_p1 = scmp.ne.s32.totalorder %s1529_s15, %s2122_s16  ;;  %p2128_p3 = scmp.lt.s32.totalorder %s2122_s16, %s2122_s16 }
  0x5a   :  { %1044 = vmatpush2.bf16.msra.mxu1 %v1879_v44  ;;  %1004 = vmatprep.subr.bf16.mxu0 %v1880_v46  ;;  %v2285_v18 = vpack.c.bf16 %v184_v14, %v184_v14  ;;  %v2287_v19 = vpack.c.bf16 %v186_v16, %v186_v16  ;;  %v1922_v28 = vld [vmem:[#allocation8 + $0xa8] ss:$16 sps:$4 sm:$0xff]   ;;  %v1930_v30 = vld [vmem:[#allocation8 + $0x8c] ss:$16 sps:$4 sm:$0xff]  }
  0x5b   :  { %1045 = vmatprep.subr.bf16.mxu1 %v1882_v47  ;;  %1014 = vmatprep.mubr.bf16.mxu0 %v189_v8  ;;  %v1925_v29 = vld [vmem:[#allocation8 + $0x2a8] ss:$16 sps:$4 sm:$0xff]   ;;  %v1933_v31 = vld [vmem:[#allocation8 + $0x28c] ss:$16 sps:$4 sm:$0xff]   ;;  %p2129_p4 = por %p2128_p3, %p2127_p2 }
  0x5c   :  { %1055 = vmatprep.mubr.bf16.mxu1 %v191_v9  ;;  %v1928_v32 = vld [vmem:[#allocation8 + $0x88] ss:$16 sps:$4 sm:$0xff]   ;;  %v1936_v34 = vld [vmem:[#allocation8 + $0x6c] ss:$16 sps:$4 sm:$0xff]  }
  0x5d   :  { %1005 = vmatpush2.bf16.msra.mxu0 %v1884_v48  ;;  %v1931_v33 = vld [vmem:[#allocation8 + $0x288] ss:$16 sps:$4 sm:$0xff]   ;;  %v1939_v35 = vld [vmem:[#allocation8 + $0x26c] ss:$16 sps:$4 sm:$0xff]   ;;  %p2130_p5 = pnand %p2129_p4, %p2123_p1 }
  0x5e   :  { %1046 = vmatpush2.bf16.msra.mxu1 %v1885_v49  ;;  %1006 = vmatprep.subr.bf16.mxu0 %v1886_v50  ;;  %v1934_v36 = vld [vmem:[#allocation8 + $0x68] ss:$16 sps:$4 sm:$0xff]   ;;  %v1942_v38 = vld [vmem:[#allocation8 + $0x4c] ss:$16 sps:$4 sm:$0xff]  }
  0x5f   :  { %1047 = vmatprep.subr.bf16.mxu1 %v1888_v51  ;;  %v1937_v37 = vld [vmem:[#allocation8 + $0x268] ss:$16 sps:$4 sm:$0xff]   ;;  %v1945_v39 = vld [vmem:[#allocation8 + $0x24c] ss:$16 sps:$4 sm:$0xff]  }
  0x60   :  { %v1940_v41 = vld [vmem:[#allocation8 + $0x48] ss:$16 sps:$4 sm:$0xff]   ;;  %v1948_v43 = vld [vmem:[#allocation8 + $0x2c] ss:$16 sps:$4 sm:$0xff]  }
  0x61   :  { %1007 = vmatpush2.bf16.msra.mxu0 %v1890_v60  ;;  %v1943_v42 = vld [vmem:[#allocation8 + $0x248] ss:$16 sps:$4 sm:$0xff]   ;;  %v1951_v44 = vld [vmem:[#allocation8 + $0x22c] ss:$16 sps:$4 sm:$0xff]  }
  0x62   :  { %1048 = vmatpush2.bf16.msra.mxu1 %v1891_v61  ;;  %1008 = vmatprep.subr.bf16.mxu0 %v1892_v62  ;;  %v1946_v45 = vld [vmem:[#allocation8 + $0x28] ss:$16 sps:$4 sm:$0xff]   ;;  %v1954_v47 = vld [vmem:[#allocation8 + $0xc] ss:$16 sps:$4 sm:$0xff]  }
  0x63   :  { %1049 = vmatprep.subr.bf16.mxu1 %v1894_v63  ;;  %v1949_v46 = vld [vmem:[#allocation8 + $0x228] ss:$16 sps:$4 sm:$0xff]   ;;  %v1957_v48 = vld [vmem:[#allocation8 + $0x20c] ss:$16 sps:$4 sm:$0xff]  }
  0x64   :  { %v1952_v49 = vld [vmem:[#allocation8 + $0x8] ss:$16 sps:$4 sm:$0xff]   ;;  %v1960_v51 = vld [vmem:[#allocation8 + $0x1ec] ss:$16 sps:$4 sm:$0xff]  }
  0x65   :  { %1009 = vmatpush2.bf16.msra.mxu0 %v1896_v0  ;;  %v1955_v50 = vld [vmem:[#allocation8 + $0x208] ss:$16 sps:$4 sm:$0xff]   ;;  %v1963_v52 = vld [vmem:[#allocation8 + $0x3ec] ss:$16 sps:$4 sm:$0xff]  }
  0x66   :  { %1050 = vmatpush2.bf16.msra.mxu1 %v1897_v1  ;;  %1010 = vmatprep.subr.bf16.mxu0 %v1898_v2  ;;  %v1958_v53 = vld [vmem:[#allocation8 + $0x1e8] ss:$16 sps:$4 sm:$0xff]   ;;  %v1966_v55 = vld [vmem:[#allocation8 + $0x1cc] ss:$16 sps:$4 sm:$0xff]  }
  0x67   :  { %1051 = vmatprep.subr.bf16.mxu1 %v1900_v3  ;;  %v1961_v54 = vld [vmem:[#allocation8 + $0x3e8] ss:$16 sps:$4 sm:$0xff]   ;;  %v1969_v56 = vld [vmem:[#allocation8 + $0x3cc] ss:$16 sps:$4 sm:$0xff]  }
  0x68   :  { %v1964_v57 = vld [vmem:[#allocation8 + $0x1c8] ss:$16 sps:$4 sm:$0xff]   ;;  %v1972_v59 = vld [vmem:[#allocation8 + $0x1ac] ss:$16 sps:$4 sm:$0xff]  }
  0x69   :  { %1011 = vmatpush2.bf16.msra.mxu0 %v1902_v6  ;;  %v1967_v58 = vld [vmem:[#allocation8 + $0x3c8] ss:$16 sps:$4 sm:$0xff]   ;;  %v1975_v60 = vld [vmem:[#allocation8 + $0x3ac] ss:$16 sps:$4 sm:$0xff]  }
  0x6a   :  { %1052 = vmatpush2.bf16.msra.mxu1 %v1903_v7  ;;  %1012 = vmatprep.subr.bf16.mxu0 %v1904_v10  ;;  %v1970_v61 = vld [vmem:[#allocation8 + $0x1a8] ss:$16 sps:$4 sm:$0xff]   ;;  %v1978_v63 = vld [vmem:[#allocation8 + $0x18c] ss:$16 sps:$4 sm:$0xff]  }
  0x6b   :  { %1053 = vmatprep.subr.bf16.mxu1 %v1906_v11  ;;  %v1973_v62 = vld [vmem:[#allocation8 + $0x3a8] ss:$16 sps:$4 sm:$0xff]   ;;  %v1981_v0 = vld [vmem:[#allocation8 + $0x38c] ss:$16 sps:$4 sm:$0xff]  }
  0x6c   :  { %v1976_v1 = vld [vmem:[#allocation8 + $0x188] ss:$16 sps:$4 sm:$0xff]   ;;  %v1984_v3 = vld [vmem:[#allocation8 + $0x16c] ss:$16 sps:$4 sm:$0xff]  }
  0x6d   :  { %1013 = vmatpush2.bf16.msra.mxu0 %v1908_v12  ;;  %v1979_v2 = vld [vmem:[#allocation8 + $0x388] ss:$16 sps:$4 sm:$0xff]   ;;  %v1987_v4 = vld [vmem:[#allocation8 + $0x36c] ss:$16 sps:$4 sm:$0xff]  }
  0x6e   :  { %1054 = vmatpush2.bf16.msra.mxu1 %v1909_v13  ;;  %1064 = vmatprep.subr.bf16.mxu0 %v1912_v15  ;;  %v1982_v5 = vld [vmem:[#allocation8 + $0x168] ss:$16 sps:$4 sm:$0xff]   ;;  %v1990_v7 = vld [vmem:[#allocation8 + $0x14c] ss:$16 sps:$4 sm:$0xff]  }
  0x6f   :  { %1105 = vmatprep.subr.bf16.mxu1 %v1915_v17  ;;  %v1985_v6 = vld [vmem:[#allocation8 + $0x368] ss:$16 sps:$4 sm:$0xff]   ;;  %v1996_v11 = vld [vmem:[#allocation8 + $0x12c] ss:$16 sps:$4 sm:$0xff]  }
  0x70   :  { %1015 = vmatmul.mubr.bf16.vlgmr.msra.gmra.mxu0 %v2285_v18  ;;  %v1991_v10 = vld [vmem:[#allocation8 + $0x348] ss:$16 sps:$4 sm:$0xff]   ;;  %v1999_v12 = vld [vmem:[#allocation8 + $0x32c] ss:$16 sps:$4 sm:$0xff]  }
  0x71   :  { %1056 = vmatmul.mubr.bf16.vlgmr.msra.gmra.mxu1 %v2287_v19  ;;  %1065 = vmatpush1.bf16.msra.mxu0 %v1910_v20  ;;  %v1994_v13 = vld [vmem:[#allocation8 + $0x128] ss:$16 sps:$4 sm:$0xff]   ;;  %v2002_v15 = vld [vmem:[#allocation8 + $0x10c] ss:$16 sps:$4 sm:$0xff]  }
  0x72   :  { %1106 = vmatpush1.bf16.msra.mxu1 %v1913_v21  ;;  %1066 = vmatprep.subr.bf16.mxu0 %v1918_v22  ;;  %v1997_v14 = vld [vmem:[#allocation8 + $0x328] ss:$16 sps:$4 sm:$0xff]   ;;  %v2005_v16 = vld [vmem:[#allocation8 + $0x30c] ss:$16 sps:$4 sm:$0xff]  }
  0x73   :  { %1107 = vmatprep.subr.bf16.mxu1 %v1921_v23  ;;  %1096 = vmatprep.mubr.bf16.mxu0 %v189_v8  ;;  %v1993_v8 = vld [vmem:[#allocation8 + $0x34c] ss:$16 sps:$4 sm:$0xff]   ;;  %v2000_v17 = vld [vmem:[#allocation8 + $0x108] ss:$16 sps:$4 sm:$0xff]   ;;  %v2008_v23 = vld [vmem:[#allocation10 + $0x70] sm:$0xff]  }
  0x74   :  { %1137 = vmatprep.mubr.bf16.mxu1 %v191_v9  ;;  %v1988_v9 = vld [vmem:[#allocation8 + $0x148] ss:$16 sps:$4 sm:$0xff]  }
  0x75   :  { %1067 = vmatpush1.bf16.msra.mxu0 %v1916_v24  ;;  %v2003_v20 = vld [vmem:[#allocation8 + $0x308] ss:$16 sps:$4 sm:$0xff]   ;;  %v2009_v24 = vld [vmem:[#allocation10 + $0x30] sm:$0xff]  }
  0x76   :  { %1108 = vmatpush1.bf16.msra.mxu1 %v1919_v25  ;;  %1068 = vmatprep.subr.bf16.mxu0 %v1924_v26  ;;  %v2006_v21 = vld [vmem:[#allocation10 + $0x78] sm:$0xff]   ;;  %v2010_v25 = vld [vmem:[#allocation10 + $0x68] sm:$0xff]  }
  0x77   :  { %1109 = vmatprep.subr.bf16.mxu1 %v1927_v27  ;;  %v2007_v22 = vld [vmem:[#allocation10 + $0x38] sm:$0xff]   ;;  %v2011_v26 = vld [vmem:[#allocation10 + $0x28] sm:$0xff]   ;;  %v2012_v27 = vld [vmem:[#allocation10 + $0x60] sm:$0xff]  }
  0x79   :  { %1069 = vmatpush1.bf16.msra.mxu0 %v1922_v28  ;;  %v2013_v28 = vld [vmem:[#allocation10 + $0x20] sm:$0xff]  }
  0x7a   :  { %1110 = vmatpush1.bf16.msra.mxu1 %v1925_v29  ;;  %1070 = vmatprep.subr.bf16.mxu0 %v1930_v30  ;;  %v2014_v29 = vld [vmem:[#allocation10 + $0x58] sm:$0xff]   ;;  %v2017_v30 = vld [vmem:[#allocation10 + $0x10] sm:$0xff]  }
  0x7b   :  { %1111 = vmatprep.subr.bf16.mxu1 %v1933_v31  ;;  %v2018_v31 = vld [vmem:[#allocation10 + $0x48] sm:$0xff]  }
  0x7d   :  { %1071 = vmatpush1.bf16.msra.mxu0 %v1928_v32  ;;  %v2019_v32 = vld [vmem:[#allocation10 + $0x8] sm:$0xff]  }
  0x7e   :  { %1112 = vmatpush1.bf16.msra.mxu1 %v1931_v33  ;;  %1072 = vmatprep.subr.bf16.mxu0 %v1936_v34  ;;  %v2020_v33 = vld [vmem:[#allocation10 + $0x40] sm:$0xff]  }
  0x7f   :  { %1113 = vmatprep.subr.bf16.mxu1 %v1939_v35  ;;  %v2021_v34 = vld [vmem:[#allocation10] sm:$0xff]   ;;  %v2022_v35 = vld [vmem:[#allocation10 + $0xf8] sm:$0xff]  }
  0x81   :  { %1073 = vmatpush1.bf16.msra.mxu0 %v1934_v36  ;;  %v2023_v36 = vld [vmem:[#allocation10 + $0xb8] sm:$0xff]  }
  0x82   :  { %1114 = vmatpush1.bf16.msra.mxu1 %v1937_v37  ;;  %1074 = vmatprep.subr.bf16.mxu0 %v1942_v38  ;;  %v2024_v37 = vld [vmem:[#allocation10 + $0xf0] sm:$0xff]  }
  0x83   :  { %1115 = vmatprep.subr.bf16.mxu1 %v1945_v39  ;;  %v2025_v38 = vld [vmem:[#allocation10 + $0xb0] sm:$0xff]   ;;  %v2026_v39 = vld [vmem:[#allocation10 + $0xe8] sm:$0xff]  }
  0x85   :  { %1075 = vmatpush1.bf16.msra.mxu0 %v1940_v41  ;;  %v2027_v41 = vld [vmem:[#allocation10 + $0xa8] sm:$0xff]  }
  0x86   :  { %1116 = vmatpush1.bf16.msra.mxu1 %v1943_v42  ;;  %1076 = vmatprep.subr.bf16.mxu0 %v1948_v43  ;;  %v2028_v42 = vld [vmem:[#allocation10 + $0xe0] sm:$0xff]  }
  0x87   :  { %1117 = vmatprep.subr.bf16.mxu1 %v1951_v44  ;;  %v2029_v43 = vld [vmem:[#allocation10 + $0xa0] sm:$0xff]   ;;  %v2030_v44 = vld [vmem:[#allocation10 + $0xd8] sm:$0xff]  }
  0x89   :  { %1077 = vmatpush1.bf16.msra.mxu0 %v1946_v45  ;;  %v2031_v45 = vld [vmem:[#allocation10 + $0x98] sm:$0xff]  }
  0x8a   :  { %1118 = vmatpush1.bf16.msra.mxu1 %v1949_v46  ;;  %1078 = vmatprep.subr.bf16.mxu0 %v1954_v47  ;;  %v2032_v46 = vld [vmem:[#allocation10 + $0xd0] sm:$0xff]  }
  0x8b   :  { %1119 = vmatprep.subr.bf16.mxu1 %v1957_v48  ;;  %v2033_v47 = vld [vmem:[#allocation10 + $0x90] sm:$0xff]   ;;  %v2034_v48 = vld [vmem:[#allocation10 + $0xc8] sm:$0xff]  }
  0x8d   :  { %1079 = vmatpush1.bf16.msra.mxu0 %v1952_v49  ;;  %v2035_v49 = vld [vmem:[#allocation10 + $0x88] sm:$0xff]  }
  0x8e   :  { %1120 = vmatpush1.bf16.msra.mxu1 %v1955_v50  ;;  %1080 = vmatprep.subr.bf16.mxu0 %v1960_v51  ;;  %v2036_v50 = vld [vmem:[#allocation10 + $0xc0] sm:$0xff]  }
  0x8f   :  { %1121 = vmatprep.subr.bf16.mxu1 %v1963_v52  ;;  %v2037_v51 = vld [vmem:[#allocation10 + $0x80] sm:$0xff]   ;;  %v323_v52 = vshrl.u32 %v87_v40, 7 }
  0x91   :  { %1081 = vmatpush2.bf16.msra.mxu0 %v1958_v53  ;;  %v324_v53 = vsub.s32 0, %v323_v52 }
  0x92   :  { %1122 = vmatpush2.bf16.msra.mxu1 %v1961_v54  ;;  %1082 = vmatprep.subr.bf16.mxu0 %v1966_v55  ;;  %v320_v54 = vld [vmem:[%s2306_s3] sm:$0xf]  ;;  %v328_v55 = vsub.s32 1, %v323_v52 }
  0x93   :  { %1123 = vmatprep.subr.bf16.mxu1 %v1969_v56  ;;  %v325_v56 = vrot.slane %v320_v54, %v324_v53 }
  0x95   :  { %1083 = vmatpush2.bf16.msra.mxu0 %v1964_v57  ;;  %v329_v57 = vrot.slane %v320_v54, %v328_v55 }
  0x96   :  { %1124 = vmatpush2.bf16.msra.mxu1 %v1967_v58  ;;  %1084 = vmatprep.subr.bf16.mxu0 %v1972_v59 }
  0x97   :  { %1125 = vmatprep.subr.bf16.mxu1 %v1975_v60 }
  0x99   :  { %1085 = vmatpush2.bf16.msra.mxu0 %v1970_v61 }
  0x9a   :  { %1126 = vmatpush2.bf16.msra.mxu1 %v1973_v62  ;;  %1086 = vmatprep.subr.bf16.mxu0 %v1978_v63 }
  0x9b   :  { %1127 = vmatprep.subr.bf16.mxu1 %v1981_v0 }
  0x9d   :  { %1087 = vmatpush2.bf16.msra.mxu0 %v1976_v1 }
  0x9e   :  { %1128 = vmatpush2.bf16.msra.mxu1 %v1979_v2  ;;  %1088 = vmatprep.subr.bf16.mxu0 %v1984_v3 }
  0x9f   :  { %1129 = vmatprep.subr.bf16.mxu1 %v1987_v4 }
  0xa1   :  { %1089 = vmatpush2.bf16.msra.mxu0 %v1982_v5 }
  0xa2   :  { %1130 = vmatpush2.bf16.msra.mxu1 %v1985_v6  ;;  %1090 = vmatprep.subr.bf16.mxu0 %v1990_v7 }
  0xa3   :  { %1131 = vmatprep.subr.bf16.mxu1 %v1993_v8 }
  0xa5   :  { %1091 = vmatpush2.bf16.msra.mxu0 %v1988_v9 }
  0xa6   :  { %1132 = vmatpush2.bf16.msra.mxu1 %v1991_v10  ;;  %1092 = vmatprep.subr.bf16.mxu0 %v1996_v11 }
  0xa7   :  { %1133 = vmatprep.subr.bf16.mxu1 %v1999_v12 }
  0xa9   :  { %1093 = vmatpush2.bf16.msra.mxu0 %v1994_v13 }
  0xaa   :  { %1134 = vmatpush2.bf16.msra.mxu1 %v1997_v14  ;;  %1094 = vmatprep.subr.bf16.mxu0 %v2002_v15 }
  0xab   :  { %1135 = vmatprep.subr.bf16.mxu1 %v2005_v16 }
  0xad   :  { %1095 = vmatpush2.bf16.msra.mxu0 %v2000_v17  ;;  %v332_v17 = vsub.s32 2, %v323_v52 }
  0xae   :  { %1136 = vmatpush2.bf16.msra.mxu1 %v2003_v20  ;;  %1759 = vmatprep.subr.bf16.mxu0 %v2006_v21  ;;  %v336_v20 = vsub.s32 3, %v323_v52 }
  0xaf   :  { %1781 = vmatprep.subr.bf16.mxu1 %v2022_v35  ;;  %v333_v21 = vrot.slane %v320_v54, %v332_v17 }
  0xb0   :  { %1097 = vmatmul.mubr.bf16.vlgmr.msra.gmra.mxu0 %v2285_v18  ;;  %v2015_v18 = vld [vmem:[#allocation10 + $0x18] sm:$0xff]  }
  0xb1   :  { %1138 = vmatmul.mubr.bf16.vlgmr.msra.gmra.mxu1 %v2287_v19  ;;  %1760 = vmatpush3.bf16.msra.mxu0 %v2007_v22  ;;  %v2016_v19 = vld [vmem:[#allocation10 + $0x50] sm:$0xff]   ;;  %v337_v22 = vrot.slane %v320_v54, %v336_v20 }
  0xb2   :  { %1761 = vmatprep.subr.bf16.mxu0 %v2008_v23  ;;  %1782 = vmatpush3.bf16.msra.mxu1 %v2023_v36 }
  0xb3   :  { %1783 = vmatprep.subr.bf16.mxu1 %v2024_v37 }
  0xb5   :  { %1762 = vmatpush3.bf16.msra.mxu0 %v2009_v24 }
  0xb6   :  { %1763 = vmatprep.subr.bf16.mxu0 %v2010_v25  ;;  %1784 = vmatpush3.bf16.msra.mxu1 %v2025_v38 }
  0xb7   :  { %1785 = vmatprep.subr.bf16.mxu1 %v2026_v39 }
  0xb9   :  { %1764 = vmatpush3.bf16.msra.mxu0 %v2011_v26 }
  0xba   :  { %1765 = vmatprep.subr.bf16.mxu0 %v2012_v27  ;;  %1786 = vmatpush3.bf16.msra.mxu1 %v2027_v41 }
  0xbb   :  { %1787 = vmatprep.subr.bf16.mxu1 %v2028_v42 }
  0xbd   :  { %1766 = vmatpush3.bf16.msra.mxu0 %v2013_v28 }
  0xbe   :  { %1767 = vmatprep.subr.bf16.mxu0 %v2014_v29  ;;  %1788 = vmatpush3.bf16.msra.mxu1 %v2029_v43 }
  0xbf   :  { %1789 = vmatprep.subr.bf16.mxu1 %v2030_v44 }
  0xc1   :  { %1768 = vmatpush3.bf16.msra.mxu0 %v2015_v18 }
  0xc2   :  { %1769 = vmatprep.subr.bf16.mxu0 %v2016_v19  ;;  %1790 = vmatpush3.bf16.msra.mxu1 %v2031_v45 }
  0xc3   :  { %1791 = vmatprep.subr.bf16.mxu1 %v2032_v46 }
  0xc5   :  { %1770 = vmatpush3.bf16.msra.mxu0 %v2017_v30 }
  0xc6   :  { %1771 = vmatprep.subr.bf16.mxu0 %v2018_v31  ;;  %1792 = vmatpush3.bf16.msra.mxu1 %v2033_v47 }
  0xc7   :  { %1793 = vmatprep.subr.bf16.mxu1 %v2034_v48 }
  0xc9   :  { %1772 = vmatpush3.bf16.msra.mxu0 %v2019_v32 }
  0xca   :  { %1773 = vmatprep.subr.bf16.mxu0 %v2020_v33  ;;  %1794 = vmatpush3.bf16.msra.mxu1 %v2035_v49 }
  0xcb   :  { %1795 = vmatprep.subr.bf16.mxu1 %v2036_v50 }
  0xcd   :  { %1774 = vmatpush3.bf16.msra.mxu0 %v2021_v34 }
  0xce   :  { %1796 = vmatpush3.bf16.msra.mxu1 %v2037_v51  ;;  %v1718_v51 = vld [vmem:[%s2308_s5] ss:$0 sm:$0xff] }
 0x130   :  { %v1016_v58 = vpop.f32.mrf.mxu0 }
 0x131   :  { %v1057_v59 = vpop.f32.mrf.mxu1  ;;  %v1017_v60 = vadd.f32 %v1016_v58, %v325_v56 }
 0x132   :  { %v1018_v61 = vpop.f32.mrf.mxu0 }
 0x133   :  { %v1059_v62 = vpop.f32.mrf.mxu1  ;;  %v1058_v63 = vadd.f32 %v1057_v59, %v1017_v60  ;;  %v1019_v0 = vadd.f32 %v1018_v61, %v329_v57 }
 0x134   :  { %v1020_v1 = vpop.f32.mrf.mxu0 }
 0x135   :  { %v1061_v2 = vpop.f32.mrf.mxu1  ;;  %v1714_v3 = vmul.f32 -1.442695, %v1058_v63  ;;  %v1060_v4 = vadd.f32 %v1059_v62, %v1019_v0 }
 0x136   :  { %v1021_v40 = vpop.f32.mrf.mxu0 }
 0x137   :  { %v1062_v5 = vpop.f32.mrf.mxu1  ;;  %2038 = vpow2.f32 %v1714_v3  ;;  %v1715_v6 = vmul.f32 -1.442695, %v1060_v4 }
 0x139   :  { %2040 = vpow2.f32 %v1715_v6 }
 0x144   :  { %v2039_v7 = vpop.eup %2038 }
 0x145   :  { %v1158_v8 = vadd.f32 1.0, %v2039_v7 }
 0x146   :  { %v2041_v9 = vpop.eup %2040 }
 0x147   :  { %2042 = vrcp.f32 %v1158_v8  ;;  %v1159_v10 = vadd.f32 1.0, %v2041_v9 }
 0x149   :  { %2044 = vrcp.f32 %v1159_v10 }
 0x154   :  { %v2043_v11 = vpop.eup %2042 }
 0x155   :  { %v1170_v13 = vmul.f32 %v2043_v11, %v1058_v63 }
 0x156   :  { %v2045_v12 = vpop.eup %2044 }
 0x157   :  { %v1171_v14 = vmul.f32 %v2045_v12, %v1060_v4  ;;  %v1174_v16 = vpack.c.bf16 %v1170_v13, %v1170_v13 }
 0x159   :  { %v1175_v15 = vpack.c.bf16 %v1171_v14, %v1171_v14 }
 0x15b   :  { %1473 = vmatprep.mubr.bf16.mxu0 %v1175_v15 }
 0x15c   :  { %1474 = vmatmul.mubr.bf16.vlgmr.msra.gmra.mxu0 %v1174_v16 }
 0x170   :  { %v1098_v23 = vpop.f32.mrf.mxu0 }
 0x171   :  { %v1139_v24 = vpop.f32.mrf.mxu1  ;;  %v1099_v25 = vadd.f32 %v1098_v23, %v333_v21 }
 0x172   :  { %v1100_v26 = vpop.f32.mrf.mxu0 }
 0x173   :  { %v1141_v27 = vpop.f32.mrf.mxu1  ;;  %v1140_v28 = vadd.f32 %v1139_v24, %v1099_v25  ;;  %v1101_v29 = vadd.f32 %v1100_v26, %v337_v22 }
 0x174   :  { %v1102_v18 = vpop.f32.mrf.mxu0 }
 0x175   :  { %v1143_v19 = vpop.f32.mrf.mxu1  ;;  %v1716_v30 = vmul.f32 -1.442695, %v1140_v28  ;;  %v1142_v31 = vadd.f32 %v1141_v27, %v1101_v29 }
 0x176   :  { %v1103_v32 = vpop.f32.mrf.mxu0 }
 0x177   :  { %v1144_v33 = vpop.f32.mrf.mxu1  ;;  %2046 = vpow2.f32 %v1716_v30  ;;  %v1717_v34 = vmul.f32 -1.442695, %v1142_v31 }
 0x179   :  { %2048 = vpow2.f32 %v1717_v34 }
 0x184   :  { %v2047_v35 = vpop.eup %2046 }
 0x185   :  { %v1160_v36 = vadd.f32 1.0, %v2047_v35 }
 0x186   :  { %v2049_v37 = vpop.eup %2048 }
 0x187   :  { %2050 = vrcp.f32 %v1160_v36  ;;  %v1161_v38 = vadd.f32 1.0, %v2049_v37 }
 0x189   :  { %2052 = vrcp.f32 %v1161_v38 }
 0x194   :  { %v2051_v39 = vpop.eup %2050 }
 0x195   :  { %v1172_v42 = vmul.f32 %v2051_v39, %v1140_v28 }
 0x196   :  { %v2053_v41 = vpop.eup %2052 }
 0x197   :  { %v1173_v43 = vmul.f32 %v2053_v41, %v1142_v31  ;;  %v1176_v45 = vpack.c.bf16 %v1172_v42, %v1172_v42 }
 0x199   :  { %v1177_v44 = vpack.c.bf16 %v1173_v43, %v1173_v43 }
 0x19b   :  { %1513 = vmatprep.mubr.bf16.mxu1 %v1177_v44 }
 0x19c   :  { %1514 = vmatmul.mubr.bf16.vlgmr.msra.gmra.mxu1 %v1176_v45 }
 0x21c   :  { %v1775_v46 = vpop.f32.mrf.mxu0 }
 0x21e   :  { %v1776_v47 = vpop.f32.mrf.mxu0 }
 0x21f   :  { %v1777_v50 = vadd.f32 %v1776_v47, %v1775_v46 }
 0x220   :  { %v1778_v48 = vpop.f32.mrf.mxu0 }
 0x221   :  { %v1476_v54 = vadd.f32 %v1777_v50, %v1718_v51 }
 0x222   :  { %v1779_v49 = vpop.f32.mrf.mxu0 }
 0x25c   :  { %v1797_v52 = vpop.f32.mrf.mxu1 }
 0x25e   :  { %v1798_v53 = vpop.f32.mrf.mxu1 }
 0x25f   :  { %v1799_v55 = vadd.f32 %v1798_v53, %v1797_v52 }
 0x260   :  { %v1800_v56 = vpop.f32.mrf.mxu1 }
 0x261   :  { %v1516_v57 = vadd.f32 %v1799_v55, %v1476_v54 }
 0x262   :  { %v1801_v58 = vpop.f32.mrf.mxu1 }
 0x263   :  { %1521 = vst [vmem:[#allocation11] sm:$0xff] %v1516_v57 }
 0x264   :  { %2133 = shalt.err (!%p2130_p5)
}
 0x265   :  { %1531 = dma.vmem_to_hbm [thread:$0]  %s1529_s15, 128, %s2309_s6, [#allocation5]  }
 0x266   :  { %2148 = dma.done.wait [#allocation5], 128  }
 0x267   :  { %2149 = vsyncadd [#allocation5], 4294967168 }
 0x268   :  { %1535 = vsyncpa [#allocation4], 1 }
 0x269   :  { %1536 = vsyncpa [#allocation9], 1 }
 0x26a   :  { %1537 = vsyncpa [#allocation5], 1 }
 0x26b   :  { %1538 = vsyncpa [#allocation6], 1 }

</bundles_post_ra>
